<compile_context>
chip_gen: v7x
topology: tpu7x:2x2x1
jax: 0.10.0
libtpu: 0.0.40
codegen_flags: <defaults>
</compile_context>

<pallas_src>
import functools
import math

import jax
import jax.numpy as jnp
from jax.experimental import pallas as pl
from jax.experimental.pallas import tpu as pltpu

_LANE = 128
_SUBLANE = 8


def _round_up(x, m):
    return ((x + m - 1) // m) * m


def _gelu(y, approx):
    if approx:
        # tanh approximation: the transcendental runs on the EUP (its own VLIW
        # slot) instead of a long erf polynomial on the 4-wide VALU.
        return jax.nn.gelu(y, approximate=True)
    # Exact erf-based GELU — matches torch.nn.functional.gelu default.
    return 0.5 * y * (1.0 + jax.lax.erf(y * (1.0 / math.sqrt(2.0))))


# ----------------------------- fused Pallas kernel ---------------------------

def _fused_mlp_kernel(*refs, num_layers, gelu_approx):
    """refs = (x_ref, w0, b0, ..., w_{L-1}, b_{L-1}, o_ref): one row-tile of the MLP.

    The layer loop is unrolled at trace time, so intermediates (h, bypass) stay
    in VMEM/vregs; only the final (tm, out_dim) tile is stored to HBM.
    """
    x_ref = refs[0]
    o_ref = refs[-1]
    wb = refs[1:-1]

    h = x_ref[...]
    bypass = None
    for i in range(num_layers):
        w = wb[2 * i][...]
        b = wb[2 * i + 1][...].astype(jnp.float32)       # broadcast once per tile
        y = jnp.dot(h.astype(w.dtype), w,
                    preferred_element_type=jnp.float32) + b   # MXU, f32 accumulation
        if i < num_layers - 1:
            y = _gelu(y, gelu_approx)                    # activation math in f32
        if i == 0:
            bypass = y
        elif i == num_layers - 2:
            y = y + bypass                               # residual AFTER gelu
        h = y
        # Dropout: identity in inference mode.
        # TODO(synk): training-mode dropout (pltpu.prng_*) not implemented.
    o_ref[...] = h.astype(o_ref.dtype)


# ----------------------------- param preparation ------------------------------

def prepare_mlp_params(params, num_layers, compute_dtype=jnp.bfloat16):
    """One-time (hoisted out of the forward path) weight/bias padding + casting.

    * Hidden dims are zero-padded to a multiple of 128 lanes so intermediate
      activations / GELUs are lane-dense inside the kernel.
    * Layer 0 keeps its natural K (input width) and the last layer keeps its
      natural N (output width), so x and the output stream at narrow widths.
    * Weights cast to `compute_dtype` (bf16 default -> native MXU path, half the
      operand DMA); biases stay f32, accumulation is f32 in-kernel.
    Zero padding keeps padded lanes exactly 0 through matmul+bias, GELU and the
    residual, so valid lanes are bit-identical.
    """
    prepped = []
    prev = params[0][0].shape[0]                     # natural input width (layer-0 K)
    for i, (w, b) in enumerate(params):
        k, n = w.shape
        n_pad = n if i == num_layers - 1 else _round_up(n, _LANE)
        wp = jnp.zeros((prev, n_pad), compute_dtype).at[:k, :n].set(
            w.astype(compute_dtype))
        bp = jnp.zeros((1, n_pad), jnp.float32).at[0, :n].set(b.astype(jnp.float32))
        prepped.append((wp, bp))
        prev = n_pad
    return prepped


# ----------------------------- wrapper ---------------------------------------

def mlp_forward(x, prepped_params, num_layers, *, tm_max=2048, gelu_approx=False):
    """Applies the fused MLP over the last axis of x; leading dims are flattened."""
    lead = x.shape[:-1]
    in_dim = x.shape[-1]
    out_dim = prepped_params[-1][0].shape[1]
    assert prepped_params[0][0].shape[0] == in_dim

    h2 = x.reshape(-1, in_dim)
    M = h2.shape[0]

    # Sublane granularity of the streamed x/out tiles (8 rows for 4-byte dtypes,
    # 16 for bf16 inputs).
    sub = _SUBLANE * max(1, 4 // jnp.dtype(x.dtype).itemsize)

    # Row tiling: biggest tile up to tm_max, Mp hugging M (<= ~sub*n_tiles dead
    # rows), and >= 2 grid steps whenever there is enough work so the "parallel"
    # axis shards across v7x's 2 TensorCores.
    m_pad = _round_up(M, sub)
    n_tiles = max(1, pl.cdiv(m_pad, tm_max))
    if n_tiles == 1 and m_pad > sub:
        n_tiles = 2
    tm = _round_up(pl.cdiv(m_pad, n_tiles), sub)
    Mp = tm * n_tiles

    xp = h2 if Mp == M else jnp.zeros((Mp, in_dim), h2.dtype).at[:M].set(h2)

    # x streamed at its natural (narrow) width; weights/biases VMEM-resident via
    # constant index_maps (no re-DMA across grid steps). VMEM footprint is tiny
    # (< a few MiB), far under even v7x's default scoped limit.
    in_specs = [pl.BlockSpec((tm, in_dim), lambda i: (i, 0))]
    flat_args = [xp]
    for (w, b) in prepped_params:
        in_specs.append(pl.BlockSpec(w.shape, lambda i: (0, 0)))
        in_specs.append(pl.BlockSpec(b.shape, lambda i: (0, 0)))
        flat_args += [w, b]

    out = pl.pallas_call(
        functools.partial(_fused_mlp_kernel, num_layers=num_layers,
                          gelu_approx=gelu_approx),
        out_shape=jax.ShapeDtypeStruct((Mp, out_dim), x.dtype),
        grid=(n_tiles,),
        in_specs=in_specs,
        # Narrow (tm, out_dim) store: ~16x fewer output HBM bytes than a padded
        # 128-lane store plus a post-kernel slice pass.
        out_specs=pl.BlockSpec((tm, out_dim), lambda i: (i, 0)),
        compiler_params=pltpu.CompilerParams(
            dimension_semantics=("parallel",)),
    )(*flat_args)

    if Mp != M:
        out = out[:M]
    return out.reshape(lead + (out_dim,))


# ----------------------------- init & reference -------------------------------

def init_mlp_params(key, input_dim, hidden_dim, output_dim, num_layers,
                    dtype=jnp.float32):
    """Deterministic init. Weight layout is (in_features, out_features)."""
    h = [hidden_dim] * (num_layers - 1)
    dims = list(zip([input_dim] + h, h + [output_dim]))
    params = []
    for (n_in, n_out) in dims:
        key, kw, kb = jax.random.split(key, 3)
        bound = 1.0 / math.sqrt(n_in)   # same scale as nn.Linear default init
        w = jax.random.uniform(kw, (n_in, n_out), dtype, -bound, bound)
        b = jax.random.uniform(kb, (n_out,), dtype, -bound, bound)
        params.append((w, b))
    return params


def mlp_forward_ref(x, params, num_layers):
    """Pure-JAX reference (f32, exact GELU) for correctness checking."""
    lead = x.shape[:-1]
    h = x.reshape(-1, x.shape[-1])
    x_bypass = None
    for i, (w, b) in enumerate(params):
        h = h @ w + b
        if i < num_layers - 1:
            h = _gelu(h, approx=False)
        if i == 0:
            x_bypass = h
        elif i == num_layers - 2:
            h = h + x_bypass
    return h.reshape(lead + (h.shape[-1],))


# ---------------------------------- main --------------------------------------

if __name__ == "__main__":
    input_dim, hidden_dim, output_dim, num_layers = 16, 32, 8, 3
    batch, seq = 2, 8

    key = jax.random.PRNGKey(0)
    kx, kp = jax.random.split(key)
    x = jax.random.normal(kx, (batch, seq, input_dim), jnp.float32)
    params = init_mlp_params(kp, input_dim, hidden_dim, output_dim, num_layers)
    ref = mlp_forward_ref(x, params, num_layers)

    # Fast path (recommended defaults): bf16 MXU operands (f32 accumulation)
    # + EUP tanh-GELU. Loose tolerance due to bf16 operands / approx GELU.
    prepped_bf16 = prepare_mlp_params(params, num_layers, jnp.bfloat16)
    out_fast = jax.block_until_ready(
        mlp_forward(x, prepped_bf16, num_layers, gelu_approx=True))
    assert out_fast.shape == (batch, seq, output_dim), out_fast.shape
    assert jnp.allclose(out_fast, ref, atol=5e-2, rtol=5e-2), "bf16 path mismatch"

    # Bit-tight path: f32 operands + exact erf GELU (matches torch defaults).
    prepped_f32 = prepare_mlp_params(params, num_layers, jnp.float32)
    out_exact = jax.block_until_ready(
        mlp_forward(x, prepped_f32, num_layers, gelu_approx=False))
    assert out_exact.shape == (batch, seq, output_dim), out_exact.shape
    assert jnp.allclose(out_exact, ref, atol=1e-5, rtol=1e-5), "f32 path mismatch"

    print("KERNEL_OK")
</pallas_src>

<mosaic_0001>
module attributes {stable_mosaic.version = 11 : i64} {
  func.func @_fused_mlp_kernel(%arg0: i32, %arg1: memref<8x16xf32, #tpu.memory_space<vmem>>, %arg2: memref<16x128xbf16, #tpu.memory_space<vmem>>, %arg3: memref<1x128xf32, #tpu.memory_space<vmem>>, %arg4: memref<128x128xbf16, #tpu.memory_space<vmem>>, %arg5: memref<1x128xf32, #tpu.memory_space<vmem>>, %arg6: memref<128x8xbf16, #tpu.memory_space<vmem>>, %arg7: memref<1x8xf32, #tpu.memory_space<vmem>>, %arg8: memref<8x8xf32, #tpu.memory_space<vmem>>) attributes {dimension_semantics = [#tpu.dimension_semantics<parallel>], iteration_bounds = array<i64: 2>, scalar_prefetch = 0 : i64, scratch_operands = 0 : i64, tpu.core_type = #tpu.core_type<tc>, window_params = [{transform_indices = @transform_0, window_bounds = array<i64: 8, 16>}, {pipeline_mode = #tpu.pipeline_mode<synchronous>, transform_indices = @transform_1, window_bounds = array<i64: 16, 128>}, {pipeline_mode = #tpu.pipeline_mode<synchronous>, transform_indices = @transform_2, window_bounds = array<i64: 1, 128>}, {pipeline_mode = #tpu.pipeline_mode<synchronous>, transform_indices = @transform_3, window_bounds = array<i64: 128, 128>}, {pipeline_mode = #tpu.pipeline_mode<synchronous>, transform_indices = @transform_4, window_bounds = array<i64: 1, 128>}, {pipeline_mode = #tpu.pipeline_mode<synchronous>, transform_indices = @transform_5, window_bounds = array<i64: 128, 8>}, {pipeline_mode = #tpu.pipeline_mode<synchronous>, transform_indices = @transform_6, window_bounds = array<i64: 1, 8>}, {transform_indices = @transform_7, window_bounds = array<i64: 8, 8>}]} {
    %c0 = arith.constant 0 : index
    %c0_0 = arith.constant 0 : index
    %0 = vector.load %arg1[%c0, %c0_0] : memref<8x16xf32, #tpu.memory_space<vmem>>, vector<8x16xf32>
    %c0_1 = arith.constant 0 : index
    %c0_2 = arith.constant 0 : index
    %1 = vector.load %arg2[%c0_1, %c0_2] : memref<16x128xbf16, #tpu.memory_space<vmem>>, vector<16x128xbf16>
    %c0_3 = arith.constant 0 : index
    %c0_4 = arith.constant 0 : index
    %2 = vector.load %arg3[%c0_3, %c0_4] : memref<1x128xf32, #tpu.memory_space<vmem>>, vector<1x128xf32>
    %3 = arith.truncf %0 : vector<8x16xf32> to vector<8x16xbf16>
    %cst = arith.constant dense<0.000000e+00> : vector<8x128xf32>
    %4 = tpu.matmul %3, %1, %cst {dimension_numbers = #tpu.dot_dimension_numbers<[1], [0], [0], [1], [0, 0, 1, 1], [], []>} : vector<8x16xbf16>, vector<16x128xbf16>, vector<8x128xf32> -> vector<8x128xf32>
    %5 = vector.broadcast %2 : vector<1x128xf32> to vector<8x128xf32>
    %6 = arith.addf %4, %5 : vector<8x128xf32>
    %7 = arith.mulf %6, %6 : vector<8x128xf32>
    %8 = arith.mulf %6, %7 : vector<8x128xf32>
    %cst_5 = arith.constant 4.471500e-02 : f32
    %9 = vector.broadcast %cst_5 : f32 to vector<8x128xf32>
    %10 = arith.mulf %9, %8 : vector<8x128xf32>
    %11 = arith.addf %6, %10 : vector<8x128xf32>
    %cst_6 = arith.constant 0.797884583 : f32
    %12 = vector.broadcast %cst_6 : f32 to vector<8x128xf32>
    %13 = arith.mulf %12, %11 : vector<8x128xf32>
    %14 = math.tanh %13 : vector<8x128xf32>
    %cst_7 = arith.constant 1.000000e+00 : f32
    %15 = vector.broadcast %cst_7 : f32 to vector<8x128xf32>
    %16 = arith.addf %15, %14 : vector<8x128xf32>
    %cst_8 = arith.constant 5.000000e-01 : f32
    %17 = vector.broadcast %cst_8 : f32 to vector<8x128xf32>
    %18 = arith.mulf %17, %16 : vector<8x128xf32>
    %19 = arith.mulf %6, %18 : vector<8x128xf32>
    %c0_9 = arith.constant 0 : index
    %c0_10 = arith.constant 0 : index
    %20 = vector.load %arg4[%c0_9, %c0_10] : memref<128x128xbf16, #tpu.memory_space<vmem>>, vector<128x128xbf16>
    %c0_11 = arith.constant 0 : index
    %c0_12 = arith.constant 0 : index
    %21 = vector.load %arg5[%c0_11, %c0_12] : memref<1x128xf32, #tpu.memory_space<vmem>>, vector<1x128xf32>
    %22 = arith.truncf %19 : vector<8x128xf32> to vector<8x128xbf16>
    %cst_13 = arith.constant dense<0.000000e+00> : vector<8x128xf32>
    %23 = tpu.matmul %22, %20, %cst_13 {dimension_numbers = #tpu.dot_dimension_numbers<[1], [0], [0], [1], [0, 0, 1, 1], [], []>} : vector<8x128xbf16>, vector<128x128xbf16>, vector<8x128xf32> -> vector<8x128xf32>
    %24 = vector.broadcast %21 : vector<1x128xf32> to vector<8x128xf32>
    %25 = arith.addf %23, %24 : vector<8x128xf32>
    %26 = arith.mulf %25, %25 : vector<8x128xf32>
    %27 = arith.mulf %25, %26 : vector<8x128xf32>
    %cst_14 = arith.constant 4.471500e-02 : f32
    %28 = vector.broadcast %cst_14 : f32 to vector<8x128xf32>
    %29 = arith.mulf %28, %27 : vector<8x128xf32>
    %30 = arith.addf %25, %29 : vector<8x128xf32>
    %cst_15 = arith.constant 0.797884583 : f32
    %31 = vector.broadcast %cst_15 : f32 to vector<8x128xf32>
    %32 = arith.mulf %31, %30 : vector<8x128xf32>
    %33 = math.tanh %32 : vector<8x128xf32>
    %cst_16 = arith.constant 1.000000e+00 : f32
    %34 = vector.broadcast %cst_16 : f32 to vector<8x128xf32>
    %35 = arith.addf %34, %33 : vector<8x128xf32>
    %cst_17 = arith.constant 5.000000e-01 : f32
    %36 = vector.broadcast %cst_17 : f32 to vector<8x128xf32>
    %37 = arith.mulf %36, %35 : vector<8x128xf32>
    %38 = arith.mulf %25, %37 : vector<8x128xf32>
    %39 = arith.addf %38, %19 : vector<8x128xf32>
    %c0_18 = arith.constant 0 : index
    %c0_19 = arith.constant 0 : index
    %40 = vector.load %arg6[%c0_18, %c0_19] : memref<128x8xbf16, #tpu.memory_space<vmem>>, vector<128x8xbf16>
    %c0_20 = arith.constant 0 : index
    %c0_21 = arith.constant 0 : index
    %41 = vector.load %arg7[%c0_20, %c0_21] : memref<1x8xf32, #tpu.memory_space<vmem>>, vector<1x8xf32>
    %42 = arith.truncf %39 : vector<8x128xf32> to vector<8x128xbf16>
    %cst_22 = arith.constant dense<0.000000e+00> : vector<8x8xf32>
    %43 = tpu.matmul %42, %40, %cst_22 {dimension_numbers = #tpu.dot_dimension_numbers<[1], [0], [0], [1], [0, 0, 1, 1], [], []>} : vector<8x128xbf16>, vector<128x8xbf16>, vector<8x8xf32> -> vector<8x8xf32>
    %44 = vector.broadcast %41 : vector<1x8xf32> to vector<8x8xf32>
    %45 = arith.addf %43, %44 : vector<8x8xf32>
    %c0_23 = arith.constant 0 : index
    %c0_24 = arith.constant 0 : index
    %46 = vector.load %arg8[%c0_23, %c0_24] : memref<8x8xf32, #tpu.memory_space<vmem>>, vector<8x8xf32>
    tpu.vector_store %arg8[%c0_23, %c0_24], %45 {strides = array<i32>} : memref<8x8xf32, #tpu.memory_space<vmem>>, vector<8x8xf32>,
    return
  }
  func.func @transform_0(%arg0: i32) -> (i32, i32) {
    %c0_i32 = arith.constant 0 : i32
    %c0_i32_0 = arith.constant 0 : i32
    return %arg0, %c0_i32 : i32, i32
  }
  func.func @transform_1(%arg0: i32) -> (i32, i32) {
    %c0_i32 = arith.constant 0 : i32
    %c0_i32_0 = arith.constant 0 : i32
    %c0_i32_1 = arith.constant 0 : i32
    return %c0_i32, %c0_i32_0 : i32, i32
  }
  func.func @transform_2(%arg0: i32) -> (i32, i32) {
    %c0_i32 = arith.constant 0 : i32
    %c0_i32_0 = arith.constant 0 : i32
    %c0_i32_1 = arith.constant 0 : i32
    return %c0_i32, %c0_i32_0 : i32, i32
  }
  func.func @transform_3(%arg0: i32) -> (i32, i32) {
    %c0_i32 = arith.constant 0 : i32
    %c0_i32_0 = arith.constant 0 : i32
    %c0_i32_1 = arith.constant 0 : i32
    return %c0_i32, %c0_i32_0 : i32, i32
  }
  func.func @transform_4(%arg0: i32) -> (i32, i32) {
    %c0_i32 = arith.constant 0 : i32
    %c0_i32_0 = arith.constant 0 : i32
    %c0_i32_1 = arith.constant 0 : i32
    return %c0_i32, %c0_i32_0 : i32, i32
  }
  func.func @transform_5(%arg0: i32) -> (i32, i32) {
    %c0_i32 = arith.constant 0 : i32
    %c0_i32_0 = arith.constant 0 : i32
    %c0_i32_1 = arith.constant 0 : i32
    return %c0_i32, %c0_i32_0 : i32, i32
  }
  func.func @transform_6(%arg0: i32) -> (i32, i32) {
    %c0_i32 = arith.constant 0 : i32
    %c0_i32_0 = arith.constant 0 : i32
    %c0_i32_1 = arith.constant 0 : i32
    return %c0_i32, %c0_i32_0 : i32, i32
  }
  func.func @transform_7(%arg0: i32) -> (i32, i32) {
    %c0_i32 = arith.constant 0 : i32
    %c0_i32_0 = arith.constant 0 : i32
    return %arg0, %c0_i32 : i32, i32
  }
}

</mosaic_0001>

<bundles_post_ra>
// kernel: tpu_custom_call.1
= control target key start
LH: loop header
LB: loop body
LE: loop exit
PB: predicated region body
PF: predicated region fallthrough
CT: control target
= control target key end

     0   :  { %12 = vsyncpa [#allocation3], 0  ;;  %s1121_s0 = inlined_call_operand.hbm [shape: f32[16,16], index: 0, kind: input, shape index: {}]   ;;  %s1122_s1 = inlined_call_operand.vmem [shape: bf16[16,128], index: 1, kind: input, shape index: {}]   ;;  %s1123_s2 = inlined_call_operand.vmem [shape: f32[1,128], index: 2, kind: input, shape index: {}]   ;;  %s1124_s3 = inlined_call_operand.vmem [shape: bf16[128,128], index: 3, kind: input, shape index: {}]   ;;  %s1125_s4 = inlined_call_operand.vmem [shape: f32[1,128], index: 4, kind: input, shape index: {}]   ;;  %s1126_s5 = inlined_call_operand.vmem [shape: bf16[128,8], index: 5, kind: input, shape index: {}]   ;;  %s1127_s6 = inlined_call_operand.vmem [shape: f32[1,8], index: 6, kind: input, shape index: {}]   ;;  %s1128_s7 = inlined_call_operand.vmem [shape: f32[16,8], index: 7, kind: output, shape index: {}]  }
   0x1   :  { %14 = vsyncpa [#allocation3 + $0x1], 0  ;;  %s934_s24 = smov 0   ;;  %s936_s25 = smov 0  }
   0x2   :  { %s938_s26 = smov 0   ;;  %s940_s27 = smov 0  }
   0x3 LB: > { %s953_s28 = sadd.s32 4294967295, %s889_s27   ;;  %s956_s29 = sadd.s32 1, %s889_s27   ;;  %s889_s27 = sphi %s940_s27, %s1136_s27   ;;  %s885_s26 = sphi %s938_s26, %s1135_s26   ;;  %s881_s25 = sphi %s936_s25, %s1134_s25   ;;  %s877_s24 = sphi %s934_s24, %s1133_s24  }
   0x4   : > { %s24_s30 = ssub.s32 %s889_s27, %s956_s29  ;;  %s27_s8 = sadd.s32 1, %s885_s26 }
   0x5   : > { %p25_p0 = scmp.eq.s32.totalorder %s24_s30, 0  ;;  %p34_p1 = scmp.ne.s32.totalorder %s885_s26, %s881_s25 }
   0x6   : > { %p35_p2 = scmp.eq.s32.totalorder %s889_s27, 0  ;;  %p40_p3 = scmp.ne.s32.totalorder %s881_s25, %s877_s24 }
   0x7   : > { %s966_s9 = scalar_select %p25_p0, %s885_s26, %s27_s8  }
   0x8   : > { %p36_p4 = por %p35_p2, %p34_p1  ;;  %p41_p5 = scmp.eq.s32.totalorder %s953_s28, 0 }
   0x9   : > { %p769_p6 = scmp.lt.s32.totalorder %s889_s27, 2  ;;  %s234_s11 = sand.u32 1, %s885_s26  }
   0xa   : > { %p970_p7 = por %p41_p5, %p40_p3  ;;  %s669_s12 = sshll.u32 %s234_s11, 3 }
   0xb   : > { %s670_s13 = sshll.u32 %s889_s27, 7  ;;  %s238_s17 = scalar_lea.vmem [#allocation2], %s669_s12 }
   0xc   : > { %s979_s16 = scalar_lea.hbm %s1121_s0, %s670_s13  ;;  %s245_s18 = sshll.u32 %s238_s17, 4  ;;  %s981_s18 = int_to_ptr.vmem [resolvable:$true] %s245_s18 }
   0xd   : > { %p983_p8 = pnand %p769_p6, %p36_p4  ;;  %s235_s20 = scalar_lea.sflag [#allocation3], %s234_s11 }
   0xe   : > { %s825_s21 = scalar_lea.hbm %s979_s16, 128  ;;  %s830_s24 = scalar_lea.hbm %s1121_s0, 256 }
   0xf   : > { %p826_p11 = scmp.ne.s32.totalorder %s979_s16, %s825_s21  ;;  %p827_p12 = pneg %p983_p8 }
  0x10   : > { %p831_p1 = scmp.lt.u32.totalorder %s979_s16, %s1121_s0  ;;  %p832_p2 = scmp.lt.u32.totalorder %s830_s24, %s825_s21 }
  0x11   : > { %p828_p13 = pnand %p827_p12, %p826_p11  ;;  %p834_p4 = scmp.lt.u32.totalorder %s825_s21, %s979_s16 }
  0x12   : > { %p833_p3 = por %p832_p2, %p831_p1 }
  0x13   : > { %p829_p0 = pneg %p828_p13 }
  0x14   : > { %p835_p5 = por %p834_p4, %p833_p3 }
  0x16   : > { %p836_p6 = pnand %p835_p5, %p829_p0 }
  0x18   : > { %839 = shalt.err (!%p836_p6)
}
  0x19   : > { %s840_s11 = scalar_lea.vmem %s981_s18, 128  ;;  %s891_s12 = smov [#allocation2]  }
  0x1a   : > { %p841_p11 = scmp.ne.s32.totalorder %s981_s18, %s840_s11  ;;  %s845_s13 = sshll.u32 %s891_s12, 4  ;;  %s846_s13 = int_to_ptr.vmem [resolvable:$false] %s845_s13 }
  0x1b   : > { %s847_s14 = scalar_lea.vmem %s846_s13, 256  ;;  %p848_p10 = scmp.lt.s32.totalorder %s981_s18, %s846_s13 }
  0x1c   : > { %p843_p13 = pnand %p841_p11, %p827_p12  ;;  %p849_p1 = scmp.lt.s32.totalorder %s847_s14, %s840_s11 }
  0x1e   : > { %p844_p9 = pneg %p843_p13  ;;  %p850_p2 = por %p849_p1, %p848_p10 }
  0x20   : > { %p851_p3 = pnand %p850_p2, %p844_p9 }
  0x22   : > { %854 = shalt.err (!%p851_p3)
}
  0x23   : > { %768 = dma.hbm_to_vmem [thread:$0]  (!%p983_p8), %s979_s16, 128, %s981_s18, %s235_s20  }
  0x24   : > { %p1131_p0 = scmp.lt.s32.totalorder %s889_s27, 3  ;;  %p1132_p4 = scmp.ge.s32.totalorder %s889_s27, 1 }
  0x26   : > { %p251_p12 = pnand %p1132_p4, %p1131_p0 }
  0x27   : > { %s256_s15 = sand.u32 (!%p251_p12), 1, %s881_s25  }
  0x28   : > { %254 = sbr.rel (%p251_p12) target bundleno = 757 (0x2f5), region = 48  ;;  %s672_s17 = sshll.u32 (!%p251_p12), %s256_s15, 3 }
  0x29   : > { %s257_s21 = scalar_lea.sflag (!%p251_p12), [#allocation3], %s256_s15  ;;  %s260_s22 = scalar_lea.vmem (!%p251_p12), [#allocation2], %s672_s17 }
  0x2f   : > { %872 = dma.done.wait (%p970_p7), %s257_s21, 128  }
  0x30   : > { %874 = vsyncadd (%p970_p7), %s257_s21, 4294967168  ;;  %v892_v0 = vmov 0.0   ;;  %vm893_vm0 = vmmov 0   ;;  %v804_v1 = vld [vmem:[%s1122_s1] sm:$0xff]   ;;  %vm312_vm1 = vcmask 130048   ;;  %v806_v5 = vld [vmem:[%s1124_s3 + $0x8] sm:$0xff]  }
  0x31   : > { %717 = vmatprep.subr.bf16.mxu0 %v892_v0  ;;  %719 = vmatprep.mubr.msk.bf16.mxu0 %vm893_vm0, %v892_v0  ;;  %v295_v2 = vld [vmem:[%s260_s22] sm:$0xff]  ;;  %v807_v6 = vld [vmem:[%s1124_s3 + $0x10] sm:$0xff]   ;;  %v808_v7 = vld [vmem:[%s1124_s3 + $0x18] sm:$0xff]   ;;  %p290_p7 = scmp.lt.s32.totalorder %s953_s28, 1  ;;  %vm599_vm2 = vcmask 64512  }
  0x32   : > { %723 = vmatprep.subr.bf16.mxu1 %v892_v0  ;;  %739 = vmatprep.mubr.msk.bf16.mxu1 %vm893_vm0, %v892_v0  ;;  %v299_v3 = vpack.c.bf16 %v295_v2, %v295_v2  ;;  %v805_v4 = vld [vmem:[%s1124_s3] sm:$0xff]   ;;  %v810_v9 = vld [vmem:[%s1124_s3 + $0x28] sm:$0xff]   ;;  %v811_v10 = vld [vmem:[%s1124_s3 + $0x30] sm:$0xff]  }
  0x33   : > { %718 = vmatpush3.bf16.msra.mxu0 %v804_v1  ;;  %724 = vmatpush3.bf16.msra.mxu1 %v805_v4  ;;  %v809_v8 = vld [vmem:[%s1124_s3 + $0x20] sm:$0xff]   ;;  %v812_v11 = vld [vmem:[%s1124_s3 + $0x38] sm:$0xff]   ;;  %v814_v29 = vld [vmem:[%s1126_s5 + $0x8] sm:$0xff]   ;;  %s1138_s28 = smov (!%p290_p7, %s953_s28), 1 }
  0x34   : > { %743 = vmatprep.subr.bf16.mxu0 %v892_v0  ;;  %725 = vmatprep.subr.bf16.mxu1 %v892_v0  ;;  %v674_v12 = vld [vmem:[%s1123_s2] ss:$0 sm:$0xff]  ;;  %v815_v30 = vld [vmem:[%s1126_s5 + $0x10] sm:$0xff]   ;;  %v816_v31 = vld [vmem:[%s1126_s5 + $0x18] sm:$0xff]   ;;  %s673_s10 = sshll.u32 %s1138_s28, 3 }
  0x35   : > { %v813_v28 = vld [vmem:[%s1126_s5] sm:$0xff]   ;;  %v818_v33 = vld [vmem:[%s1126_s5 + $0x28] sm:$0xff]   ;;  %v819_v34 = vld [vmem:[%s1126_s5 + $0x30] sm:$0xff]   ;;  %s293_s24 = scalar_lea.vmem %s1128_s7, %s673_s10 }
  0x36   : > { %720 = vmatmul.mubr.msk.bf16.vlgmr.msra.gmra.mrb[0].mxu0 %vm312_vm1, %v299_v3  ;;  %v817_v32 = vld [vmem:[%s1126_s5 + $0x20] sm:$0xff]   ;;  %v820_v35 = vld [vmem:[%s1126_s5 + $0x38] sm:$0xff]  }
  0x37   : > { %759 = vmatprep.mubr.msk.bf16.mxu0 %vm893_vm0, %v892_v0  ;;  %726 = vmatpush3.bf16.msra.mxu1 %v806_v5  ;;  %v677_v36 = vld [vmem:[%s1125_s4] ss:$0 sm:$0xff] }
  0x38   : > { %727 = vmatprep.subr.bf16.mxu1 %v892_v0  ;;  %744 = vmatpush3.bf16.msra.mxu0 %v813_v28  ;;  %v686_v53 = vld [vmem:[%s1127_s6] ss:$0 sm:$0xff] }
  0x39   : > { %745 = vmatprep.subr.bf16.mxu0 %v892_v0 }
  0x3b   : > { %728 = vmatpush3.bf16.msra.mxu1 %v807_v6 }
  0x3c   : > { %729 = vmatprep.subr.bf16.mxu1 %v892_v0  ;;  %746 = vmatpush3.bf16.msra.mxu0 %v814_v29 }
  0x3d   : > { %747 = vmatprep.subr.bf16.mxu0 %v892_v0 }
  0x3f   : > { %730 = vmatpush3.bf16.msra.mxu1 %v808_v7 }
  0x40   : > { %731 = vmatprep.subr.bf16.mxu1 %v892_v0  ;;  %748 = vmatpush3.bf16.msra.mxu0 %v815_v30 }
  0x41   : > { %749 = vmatprep.subr.bf16.mxu0 %v892_v0 }
  0x43   : > { %732 = vmatpush3.bf16.msra.mxu1 %v809_v8 }
  0x44   : > { %733 = vmatprep.subr.bf16.mxu1 %v892_v0  ;;  %750 = vmatpush3.bf16.msra.mxu0 %v816_v31 }
  0x45   : > { %751 = vmatprep.subr.bf16.mxu0 %v892_v0 }
  0x47   : > { %734 = vmatpush3.bf16.msra.mxu1 %v810_v9 }
  0x48   : > { %735 = vmatprep.subr.bf16.mxu1 %v892_v0  ;;  %752 = vmatpush3.bf16.msra.mxu0 %v817_v32 }
  0x49   : > { %753 = vmatprep.subr.bf16.mxu0 %v892_v0 }
  0x4b   : > { %736 = vmatpush3.bf16.msra.mxu1 %v811_v10 }
  0x4c   : > { %737 = vmatprep.subr.bf16.mxu1 %v892_v0  ;;  %754 = vmatpush3.bf16.msra.mxu0 %v818_v33 }
  0x4d   : > { %755 = vmatprep.subr.bf16.mxu0 %v892_v0 }
  0x4f   : > { %738 = vmatpush3.bf16.msra.mxu1 %v812_v11 }
  0x50   : > { %756 = vmatpush3.bf16.msra.mxu0 %v819_v34 }
  0x51   : > { %757 = vmatprep.subr.bf16.mxu0 %v892_v0 }
  0x54   : > { %758 = vmatpush3.bf16.msra.mxu0 %v820_v35 }
 0x109   : > { %v350_v13 = vpop.f32.mrb[0].mxu0 }
 0x10a   : > { %v351_v14 = vadd.f32 %v674_v12, %v350_v13  ;;  %v721_v15 = vpop.f32.mrb[1].mxu0 }
 0x10b   : > { %v353_v16 = vpop.f32.mrb[2].mxu0 }
 0x10c   : > { %v356_v17 = vmul.f32 %v351_v14, %v351_v14  ;;  %v722_v18 = vpop.f32.mrb[3].mxu0 }
 0x10e   : > { %v357_v19 = vmul.f32 %v356_v17, %v351_v14 }
 0x110   : > { %v358_v20 = vmul.f32 0.044715, %v357_v19 }
 0x112   : > { %v359_v21 = vadd.f32 %v358_v20, %v351_v14 }
 0x114   : > { %v360_v22 = vmul.f32 0.7978846, %v359_v21 }
 0x116   : > { %821 = vtanh.f32 %v360_v22 }
 0x120   : > { %v822_v23 = vpop.eup %821 }
 0x121   : > { %v362_v24 = vadd.f32 1.0, %v822_v23 }
 0x123   : > { %v363_v25 = vmul.f32 0.5, %v362_v24 }
 0x125   : > { %v364_v26 = vmul.f32 %v363_v25, %v351_v14 }
 0x127   : > { %v382_v27 = vpack.c.bf16 %v364_v26, %v364_v26 }
 0x129   : > { %740 = vmatmul.mubr.bf16.vlgmr.msra.gmra.mrb[0].mxu1 %v382_v27 }
 0x1fc   : > { %v471_v37 = vpop.f32.mrb[0].mxu1 }
 0x1fd   : > { %v472_v38 = vadd.f32 %v677_v36, %v471_v37  ;;  %v741_v39 = vpop.f32.mrb[1].mxu1 }
 0x1fe   : > { %v474_v40 = vpop.f32.mrb[2].mxu1 }
 0x1ff   : > { %v477_v41 = vmul.f32 %v472_v38, %v472_v38  ;;  %v742_v42 = vpop.f32.mrb[3].mxu1 }
 0x201   : > { %v478_v43 = vmul.f32 %v477_v41, %v472_v38 }
 0x203   : > { %v479_v44 = vmul.f32 0.044715, %v478_v43 }
 0x205   : > { %v480_v45 = vadd.f32 %v479_v44, %v472_v38 }
 0x207   : > { %v481_v46 = vmul.f32 0.7978846, %v480_v45 }
 0x209   : > { %823 = vtanh.f32 %v481_v46 }
 0x213   : > { %v824_v47 = vpop.eup %823 }
 0x214   : > { %v483_v48 = vadd.f32 1.0, %v824_v47 }
 0x216   : > { %v484_v49 = vmul.f32 0.5, %v483_v48 }
 0x218   : > { %v485_v50 = vmul.f32 %v484_v49, %v472_v38 }
 0x21a   : > { %v486_v51 = vadd.f32 %v485_v50, %v364_v26 }
 0x21c   : > { %v504_v52 = vpack.c.bf16 %v486_v51, %v486_v51 }
 0x21e   : > { %760 = vmatmul.mubr.bf16.vlgmr.msra.gmra.mrb[4].mxu0 %v504_v52 }
 0x2f1   : > { %v593_v54 = vpop.f32.mrb[4].mxu0 }
 0x2f2   : > { %v594_v55 = vadd.f32 %v686_v53, %v593_v54  ;;  %v761_v56 = vpop.f32.mrb[5].mxu0 }
 0x2f3   : > { %v596_v57 = vpop.f32.mrb[6].mxu0 }
 0x2f4   : > { %600 = vst.msk [vmem:[%s293_s24] sm:$0xff] %vm599_vm2, %v594_v55  ;;  %v762_v58 = vpop.f32.mrb[7].mxu0 }
 0x2f5 PF: > { %p17_p8 = scmp.ge.s32.totalorder %s956_s29, 4   ;;  %s1133_s24 = smov %s881_s25 }
 0x2f6   : > { %s1134_s25 = smov %s885_s26  ;;  %s1135_s26 = smov %s966_s9 }
 0x2f7   : > { %s1136_s27 = smov %s956_s29  ;;  %19 = sbr.rel (!%p17_p8) target bundleno = 3 (0x3), region = 88 }
 0x2fe   :  { %620 = vsyncpa [#allocation3], 1 }
 0x2ff   :  { %622 = vsyncpa [#allocation3 + $0x1], 1 }

</bundles_post_ra>
